<compile_context>
chip_gen: v6e
topology: v6e:2x2x1
jax: 0.10.0
libtpu: 0.0.40
codegen_flags: <defaults>
</compile_context>

<pallas_src>
import functools

import jax
import jax.numpy as jnp
from jax import lax
from jax.experimental import pallas as pl
from jax.experimental.pallas import tpu as pltpu


def _flash_mha_kernel(q_ref, k_ref, v_ref, wo_ref, o_ref,
                      m_sc, l_sc, acc_sc, *, num_heads):
    """One (batch, q_tile, kv_tile) grid step of head-batched flash attention
    fused with the output projection.

    q_ref  : (1, H, tq, dqk)  pre-scaled queries (1/temperature folded in)
    k_ref  : (1, H, tk, dqk)
    v_ref  : (1, H, tk, dv)
    wo_ref : (H*dv, vo_pad)   output projection, lane-padded to a 128 multiple
    o_ref  : (1, tq, vo_pad)  output tile (resident across the kv axis)
    m_sc   : (H, tq, 1)  f32  running row max
    l_sc   : (H, tq, 1)  f32  running softmax denominator
    acc_sc : (H, tq, dv) f32  running unnormalized attention values
    """
    kv = pl.program_id(2)
    H = num_heads

    @pl.when(kv == 0)
    def _init():
        m_sc[...] = jnp.full(m_sc.shape, -jnp.inf, dtype=m_sc.dtype)
        l_sc[...] = jnp.zeros(l_sc.shape, dtype=l_sc.dtype)
        acc_sc[...] = jnp.zeros(acc_sc.shape, dtype=acc_sc.dtype)

    q = q_ref[0]                       # (H, tq, dqk)
    k = k_ref[0]                       # (H, tk, dqk)
    v = v_ref[0]                       # (H, tk, dv)
    cdt = q.dtype                      # MXU operand dtype (bf16 if requested)

    # Logits for this KV tile, heads batched (no explicit k.T / XLU transpose).
    s = jnp.einsum('hqd,hkd->hqk', q, k,
                   preferred_element_type=jnp.float32)          # (H, tq, tk)

    # --- online softmax update (f32 accumulators) ---
    m_prev = m_sc[...]
    m_new = jnp.maximum(m_prev, jnp.max(s, axis=-1, keepdims=True))
    alpha = jnp.exp(m_prev - m_new)                             # (H, tq, 1)
    p = jnp.exp(s - m_new)                                      # (H, tq, tk)
    l_sc[...] = alpha * l_sc[...] + jnp.sum(p, axis=-1, keepdims=True)
    # Accumulate UNNORMALIZED values; normalize once at finalize.
    acc_sc[...] = alpha * acc_sc[...] + jnp.einsum(
        'hqk,hkd->hqd', p.astype(cdt), v, preferred_element_type=jnp.float32)
    m_sc[...] = m_new

    @pl.when(kv == pl.num_programs(2) - 1)
    def _finalize():
        inv_l = pl.reciprocal(l_sc[...], approx=True)           # EUP vrcp
        av = acc_sc[...] * inv_l                                # (H, tq, dv)
        # Single lane-dense MXU matmul for the output projection:
        # concat heads -> (tq, H*dv), contract with (H*dv, vo_pad).
        av_flat = jnp.concatenate([av[h] for h in range(H)], axis=-1)
        o = jnp.dot(av_flat.astype(cdt), wo_ref[...],
                    preferred_element_type=jnp.float32)         # (tq, vo_pad)
        o_ref[0] = o.astype(o_ref.dtype)


def _pick_tile(seq_len, max_tile):
    for t in (512, 256, 128, 64, 32, 16, 8):
        if t <= max_tile and seq_len % t == 0:
            return t
    return seq_len


def _vmem_budget_bytes():
    # Generation-aware VMEM budget: ~75% of physical per-core VMEM
    # (v5e/v6e: 128 MiB -> ~96 MiB, v7x: 64 MiB -> 48 MiB).
    try:
        cap = int(pltpu.get_tpu_info().vmem_capacity_bytes)
    except Exception:
        cap = 64 * 1024 * 1024        # conservative fallback (v7x per-TC)
    return min(100 * 1024 * 1024, max(32 * 1024 * 1024, (cap * 3) // 4))


def multihead_attention(x, w_qk, w_v, w_o, *, num_heads, qk_dim, v_dim,
                        matmul_dtype=None):
    """Forward pass of MultiheadAttention (eval mode, mask=None).

    x     : (B, S, D) or (S, D)
    w_qk  : (2*qk_dim*num_heads, D)          PyTorch nn.Linear layout
    w_v   : (v_dim*num_heads, D)
    w_o   : (v_dim*num_heads, v_dim*num_heads)
    matmul_dtype : optional dtype (e.g. jnp.bfloat16) for the in-kernel MXU
                   operands; accumulation stays f32. Default: x.dtype.
    """
    x = jnp.asarray(x)
    no_batch = x.ndim == 2
    if no_batch:
        x = x[None]
    B, S, D = x.shape
    H, dqk, dv = num_heads, qk_dim, v_dim
    vo = dv * H
    vo_pad = ((vo + 127) // 128) * 128
    temperature = float(qk_dim) ** 0.5
    cdt = jnp.dtype(matmul_dtype) if matmul_dtype is not None else x.dtype

    # --- projections: one XLA matmul each, head-major (B, H, S, d) layout.
    # (Done once here instead of per Q tile in the kernel.)
    w_qk = jnp.asarray(w_qk).reshape(H, 2 * dqk, D)
    w_q = w_qk[:, :dqk, :].astype(jnp.float32)                  # (H, dqk, D)
    w_k = w_qk[:, dqk:, :].astype(jnp.float32)
    w_v3 = jnp.asarray(w_v).astype(jnp.float32).reshape(H, dv, D)
    xf = x.astype(jnp.float32)
    hi = lax.Precision.HIGHEST
    # 1/temperature applied in f32 (before any bf16 cast).
    q = (jnp.einsum('bsd,hed->bhse', xf, w_q, precision=hi)
         / temperature).astype(cdt)                             # (B, H, S, dqk)
    k = jnp.einsum('bsd,hed->bhse', xf, w_k, precision=hi).astype(cdt)
    v = jnp.einsum('bsd,hed->bhse', xf, w_v3, precision=hi).astype(cdt)

    # Output projection weight: (H*dv, vo), lane-padded to a 128 multiple so
    # the kernel issues unmasked vector stores; the pad is sliced off below.
    w_o2 = jnp.asarray(w_o).astype(jnp.float32).T               # (H*dv, vo)
    w_o2 = jnp.pad(w_o2, ((0, 0), (0, vo_pad - vo))).astype(cdt)

    tq = _pick_tile(S, 256)
    tk = _pick_tile(S, 512)
    n_q, n_kv = S // tq, S // tk
    grid = (B, n_q, n_kv)              # kv (reduction) axis innermost

    itemsize = jnp.dtype(cdt).itemsize
    cost = pl.CostEstimate(
        flops=int(2 * B * H * S * S * (dqk + dv) + 2 * B * S * (H * dv) * vo_pad),
        transcendentals=int(B * H * S * S),
        bytes_accessed=int(q.size * itemsize
                           + (k.size + v.size) * itemsize * n_q
                           + w_o2.size * itemsize
                           + B * S * vo_pad * x.dtype.itemsize),
    )

    kernel = functools.partial(_flash_mha_kernel, num_heads=H)

    out = pl.pallas_call(
        kernel,
        out_shape=jax.ShapeDtypeStruct((B, S, vo_pad), x.dtype),
        grid_spec=pltpu.PrefetchScalarGridSpec(
            num_scalar_prefetch=0,
            grid=grid,
            in_specs=[
                # Q tile: constant across the kv axis -> stays VMEM-resident.
                pl.BlockSpec((1, H, tq, dqk), lambda b, qi, ki: (b, 0, qi, 0)),
                # K / V tiles stream along the kv (reduction) axis.
                pl.BlockSpec((1, H, tk, dqk), lambda b, qi, ki: (b, 0, ki, 0)),
                pl.BlockSpec((1, H, tk, dv), lambda b, qi, ki: (b, 0, ki, 0)),
                # Output projection weight: grid-invariant, VMEM-resident.
                pl.BlockSpec((H * dv, vo_pad), lambda b, qi, ki: (0, 0)),
            ],
            out_specs=pl.BlockSpec((1, tq, vo_pad), lambda b, qi, ki: (b, qi, 0)),
            scratch_shapes=[
                pltpu.VMEM((H, tq, 1), jnp.float32),   # running max
                pltpu.VMEM((H, tq, 1), jnp.float32),   # running denom
                pltpu.VMEM((H, tq, dv), jnp.float32),  # unnormalized values
            ],
        ),
        compiler_params=pltpu.CompilerParams(
            # batch / q-tile independent -> both "parallel" (megacore on v7x
            # even for B == 1); kv is the reduction -> "arbitrary".
            dimension_semantics=("parallel", "parallel", "arbitrary"),
            vmem_limit_bytes=_vmem_budget_bytes(),
        ),
        cost_estimate=cost,
    )(q, k, v, w_o2)

    out = out[..., :vo]
    return out[0] if no_batch else out


def _reference(x, w_qk, w_v, w_o, *, num_heads, qk_dim, v_dim):
    """Pure-JAX reference mirroring the PyTorch forward (eval mode)."""
    B, S, D = x.shape
    temperature = float(qk_dim) ** 0.5
    hi = lax.Precision.HIGHEST
    qk = jnp.einsum('bsd,od->bso', x, w_qk, precision=hi)
    v = jnp.einsum('bsd,od->bso', x, w_v, precision=hi)
    qk = qk.reshape(B, S, num_heads, 2 * qk_dim).transpose(0, 2, 1, 3)
    q, k = qk[..., :qk_dim], qk[..., qk_dim:]
    v = v.reshape(B, S, num_heads, v_dim).transpose(0, 2, 1, 3)
    logits = jnp.einsum('bhqd,bhkd->bhqk', q / temperature, k, precision=hi)
    attn = jax.nn.softmax(logits, axis=-1)
    av = jnp.einsum('bhqk,bhkd->bhqd', attn, v, precision=hi)
    av = av.transpose(0, 2, 1, 3).reshape(B, S, v_dim * num_heads)
    return jnp.einsum('bso,po->bsp', av, w_o, precision=hi)


if __name__ == "__main__":
    # Small shapes consistent with the module.
    B, S = 2, 8
    input_dim, qk_dim, v_dim, num_heads = 32, 16, 16, 4

    key = jax.random.PRNGKey(0)
    kx, kqk, kv, ko = jax.random.split(key, 4)

    x = jax.random.normal(kx, (B, S, input_dim), dtype=jnp.float32)
    # Deterministic "Linear" weights, PyTorch layout (out_features, in_features).
    w_qk = 0.1 * jax.random.normal(kqk, (2 * qk_dim * num_heads, input_dim), jnp.float32)
    w_v = 0.1 * jax.random.normal(kv, (v_dim * num_heads, input_dim), jnp.float32)
    w_o = 0.1 * jax.random.normal(ko, (v_dim * num_heads, v_dim * num_heads), jnp.float32)

    out = multihead_attention(x, w_qk, w_v, w_o,
                              num_heads=num_heads, qk_dim=qk_dim, v_dim=v_dim)
    out = jax.block_until_ready(out)

    ref = _reference(x, w_qk, w_v, w_o,
                     num_heads=num_heads, qk_dim=qk_dim, v_dim=v_dim)
    assert out.shape == (B, S, v_dim * num_heads)
    # EUP approximate reciprocal in the softmax denominator -> ~1e-3 relative.
    assert jnp.allclose(out, ref, atol=5e-3, rtol=5e-3), "mismatch vs reference (f32)"

    # bf16 MXU-operand path (f32 accumulation) -- the v6e/v7x throughput mode.
    out_bf16 = multihead_attention(x, w_qk, w_v, w_o,
                                   num_heads=num_heads, qk_dim=qk_dim,
                                   v_dim=v_dim, matmul_dtype=jnp.bfloat16)
    out_bf16 = jax.block_until_ready(out_bf16)
    assert jnp.allclose(out_bf16, ref, atol=5e-2, rtol=5e-2), "mismatch vs reference (bf16)"

    print("KERNEL_OK")
</pallas_src>

<mosaic_0001>
module attributes {stable_mosaic.version = 11 : i64} {
  func.func @_flash_mha_kernel(%arg0: i32, %arg1: i32, %arg2: i32, %arg3: memref<1x4x8x16xf32, #tpu.memory_space<vmem>>, %arg4: memref<1x4x8x16xf32, #tpu.memory_space<vmem>>, %arg5: memref<1x4x8x16xf32, #tpu.memory_space<vmem>>, %arg6: memref<64x128xf32, #tpu.memory_space<vmem>>, %arg7: memref<1x8x128xf32, #tpu.memory_space<vmem>>, %arg8: memref<4x8x1xf32, #tpu.memory_space<vmem>>, %arg9: memref<4x8x1xf32, #tpu.memory_space<vmem>>, %arg10: memref<4x8x16xf32, #tpu.memory_space<vmem>>) attributes {dimension_semantics = [#tpu.dimension_semantics<parallel>, #tpu.dimension_semantics<parallel>, #tpu.dimension_semantics<arbitrary>], iteration_bounds = array<i64: 2, 1, 1>, scalar_prefetch = 0 : i64, scratch_operands = 3 : i64, tpu.core_type = #tpu.core_type<tc>, window_params = [{transform_indices = @transform_0, window_bounds = array<i64: 1, 4, 8, 16>}, {transform_indices = @transform_1, window_bounds = array<i64: 1, 4, 8, 16>}, {transform_indices = @transform_2, window_bounds = array<i64: 1, 4, 8, 16>}, {pipeline_mode = #tpu.pipeline_mode<synchronous>, transform_indices = @transform_3, window_bounds = array<i64: 64, 128>}, {transform_indices = @transform_4, window_bounds = array<i64: 1, 8, 128>}]} {
    %c0_i32 = arith.constant 0 : i32
    %0 = arith.cmpi eq, %arg2, %c0_i32 : i32
    %1 = arith.extui %0 : i1 to i32
    %c0_i32_0 = arith.constant 0 : i32
    %2 = arith.cmpi ne, %1, %c0_i32_0 : i32
    scf.if %2 {
      %cst_35 = arith.constant 0xFF800000 : f32
      %35 = vector.broadcast %cst_35 : f32 to vector<4x8x1xf32>
      %c0_36 = arith.constant 0 : index
      %c0_37 = arith.constant 0 : index
      %c0_38 = arith.constant 0 : index
      %36 = vector.load %arg8[%c0_36, %c0_37, %c0_38] : memref<4x8x1xf32, #tpu.memory_space<vmem>>, vector<4x8x1xf32>
      tpu.vector_store %arg8[%c0_36, %c0_37, %c0_38], %35 {strides = array<i32>} : memref<4x8x1xf32, #tpu.memory_space<vmem>>, vector<4x8x1xf32>,
      %cst_39 = arith.constant 0.000000e+00 : f32
      %37 = vector.broadcast %cst_39 : f32 to vector<4x8x1xf32>
      %c0_40 = arith.constant 0 : index
      %c0_41 = arith.constant 0 : index
      %c0_42 = arith.constant 0 : index
      %38 = vector.load %arg9[%c0_40, %c0_41, %c0_42] : memref<4x8x1xf32, #tpu.memory_space<vmem>>, vector<4x8x1xf32>
      tpu.vector_store %arg9[%c0_40, %c0_41, %c0_42], %37 {strides = array<i32>} : memref<4x8x1xf32, #tpu.memory_space<vmem>>, vector<4x8x1xf32>,
      %cst_43 = arith.constant 0.000000e+00 : f32
      %39 = vector.broadcast %cst_43 : f32 to vector<4x8x16xf32>
      %c0_44 = arith.constant 0 : index
      %c0_45 = arith.constant 0 : index
      %c0_46 = arith.constant 0 : index
      %40 = vector.load %arg10[%c0_44, %c0_45, %c0_46] : memref<4x8x16xf32, #tpu.memory_space<vmem>>, vector<4x8x16xf32>
      tpu.vector_store %arg10[%c0_44, %c0_45, %c0_46], %39 {strides = array<i32>} : memref<4x8x16xf32, #tpu.memory_space<vmem>>, vector<4x8x16xf32>,
    } else {
    }
    %c0 = arith.constant 0 : index
    %c0_1 = arith.constant 0 : index
    %c0_2 = arith.constant 0 : index
    %c0_3 = arith.constant 0 : index
    %3 = vector.load %arg3[%c0, %c0_1, %c0_2, %c0_3] : memref<1x4x8x16xf32, #tpu.memory_space<vmem>>, vector<1x4x8x16xf32>
    %4 = vector.shape_cast %3 : vector<1x4x8x16xf32> to vector<4x8x16xf32>
    %c0_4 = arith.constant 0 : index
    %c0_5 = arith.constant 0 : index
    %c0_6 = arith.constant 0 : index
    %c0_7 = arith.constant 0 : index
    %5 = vector.load %arg4[%c0_4, %c0_5, %c0_6, %c0_7] : memref<1x4x8x16xf32, #tpu.memory_space<vmem>>, vector<1x4x8x16xf32>
    %6 = vector.shape_cast %5 : vector<1x4x8x16xf32> to vector<4x8x16xf32>
    %c0_8 = arith.constant 0 : index
    %c0_9 = arith.constant 0 : index
    %c0_10 = arith.constant 0 : index
    %c0_11 = arith.constant 0 : index
    %7 = vector.load %arg5[%c0_8, %c0_9, %c0_10, %c0_11] : memref<1x4x8x16xf32, #tpu.memory_space<vmem>>, vector<1x4x8x16xf32>
    %8 = vector.shape_cast %7 : vector<1x4x8x16xf32> to vector<4x8x16xf32>
    "tpu.trace_start"() <{level = 10 : i32, message = "hqd,hkd->hqk"}> : () -> ()
    %cst = arith.constant dense<0.000000e+00> : vector<4x8x8xf32>
    %9 = tpu.matmul %4, %6, %cst {dimension_numbers = #tpu.dot_dimension_numbers<[2], [2], [1], [1], [0, 0, 0, 1, 1, 1], [0], [0]>} : vector<4x8x16xf32>, vector<4x8x16xf32>, vector<4x8x8xf32> -> vector<4x8x8xf32>
    "tpu.trace_stop"() : () -> ()
    %c0_12 = arith.constant 0 : index
    %c0_13 = arith.constant 0 : index
    %c0_14 = arith.constant 0 : index
    %10 = vector.load %arg8[%c0_12, %c0_13, %c0_14] : memref<4x8x1xf32, #tpu.memory_space<vmem>>, vector<4x8x1xf32>
    %cst_15 = arith.constant dense<0xFF800000> : vector<4x8xf32>
    %11 = vector.multi_reduction <maximumf>, %9, %cst_15 [2] : vector<4x8x8xf32> to vector<4x8xf32>
    %12 = vector.shape_cast %11 : vector<4x8xf32> to vector<4x8x1xf32>
    %13 = arith.maximumf %10, %12 : vector<4x8x1xf32>
    %14 = arith.subf %10, %13 : vector<4x8x1xf32>
    %15 = math.exp %14 : vector<4x8x1xf32>
    %16 = vector.broadcast %13 : vector<4x8x1xf32> to vector<4x8x8xf32>
    %17 = arith.subf %9, %16 : vector<4x8x8xf32>
    %18 = math.exp %17 : vector<4x8x8xf32>
    %c0_16 = arith.constant 0 : index
    %c0_17 = arith.constant 0 : index
    %c0_18 = arith.constant 0 : index
    %19 = vector.load %arg9[%c0_16, %c0_17, %c0_18] : memref<4x8x1xf32, #tpu.memory_space<vmem>>, vector<4x8x1xf32>
    %20 = arith.mulf %15, %19 : vector<4x8x1xf32>
    %cst_19 = arith.constant dense<0.000000e+00> : vector<4x8xf32>
    %21 = vector.multi_reduction <add>, %18, %cst_19 [2] : vector<4x8x8xf32> to vector<4x8xf32>
    %22 = vector.shape_cast %21 : vector<4x8xf32> to vector<4x8x1xf32>
    %23 = arith.addf %20, %22 : vector<4x8x1xf32>
    %c0_20 = arith.constant 0 : index
    %c0_21 = arith.constant 0 : index
    %c0_22 = arith.constant 0 : index
    %24 = vector.load %arg9[%c0_20, %c0_21, %c0_22] : memref<4x8x1xf32, #tpu.memory_space<vmem>>, vector<4x8x1xf32>
    tpu.vector_store %arg9[%c0_20, %c0_21, %c0_22], %23 {strides = array<i32>} : memref<4x8x1xf32, #tpu.memory_space<vmem>>, vector<4x8x1xf32>,
    %c0_23 = arith.constant 0 : index
    %c0_24 = arith.constant 0 : index
    %c0_25 = arith.constant 0 : index
    %25 = vector.load %arg10[%c0_23, %c0_24, %c0_25] : memref<4x8x16xf32, #tpu.memory_space<vmem>>, vector<4x8x16xf32>
    %26 = vector.broadcast %15 : vector<4x8x1xf32> to vector<4x8x16xf32>
    %27 = arith.mulf %26, %25 : vector<4x8x16xf32>
    "tpu.trace_start"() <{level = 10 : i32, message = "hqk,hkd->hqd"}> : () -> ()
    %cst_26 = arith.constant dense<0.000000e+00> : vector<4x8x16xf32>
    %28 = tpu.matmul %18, %8, %cst_26 {dimension_numbers = #tpu.dot_dimension_numbers<[2], [1], [1], [2], [0, 0, 0, 1, 1, 2], [0], [0]>} : vector<4x8x8xf32>, vector<4x8x16xf32>, vector<4x8x16xf32> -> vector<4x8x16xf32>
    "tpu.trace_stop"() : () -> ()
    %29 = arith.addf %27, %28 : vector<4x8x16xf32>
    %c0_27 = arith.constant 0 : index
    %c0_28 = arith.constant 0 : index
    %c0_29 = arith.constant 0 : index
    %30 = vector.load %arg10[%c0_27, %c0_28, %c0_29] : memref<4x8x16xf32, #tpu.memory_space<vmem>>, vector<4x8x16xf32>
    tpu.vector_store %arg10[%c0_27, %c0_28, %c0_29], %29 {strides = array<i32>} : memref<4x8x16xf32, #tpu.memory_space<vmem>>, vector<4x8x16xf32>,
    %c0_30 = arith.constant 0 : index
    %c0_31 = arith.constant 0 : index
    %c0_32 = arith.constant 0 : index
    %31 = vector.load %arg8[%c0_30, %c0_31, %c0_32] : memref<4x8x1xf32, #tpu.memory_space<vmem>>, vector<4x8x1xf32>
    tpu.vector_store %arg8[%c0_30, %c0_31, %c0_32], %13 {strides = array<i32>} : memref<4x8x1xf32, #tpu.memory_space<vmem>>, vector<4x8x1xf32>,
    %c0_i32_33 = arith.constant 0 : i32
    %32 = arith.cmpi eq, %arg2, %c0_i32_33 : i32
    %33 = arith.extui %32 : i1 to i32
    %c0_i32_34 = arith.constant 0 : i32
    %34 = arith.cmpi ne, %33, %c0_i32_34 : i32
    scf.if %34 {
      %c0_35 = arith.constant 0 : index
      %c0_36 = arith.constant 0 : index
      %c0_37 = arith.constant 0 : index
      %35 = vector.load %arg9[%c0_35, %c0_36, %c0_37] : memref<4x8x1xf32, #tpu.memory_space<vmem>>, vector<4x8x1xf32>
      %36 = tpu.reciprocal %35 {approx = true} : vector<4x8x1xf32> -> vector<4x8x1xf32>
      %c0_38 = arith.constant 0 : index
      %c0_39 = arith.constant 0 : index
      %c0_40 = arith.constant 0 : index
      %37 = vector.load %arg10[%c0_38, %c0_39, %c0_40] : memref<4x8x16xf32, #tpu.memory_space<vmem>>, vector<4x8x16xf32>
      %38 = vector.broadcast %36 : vector<4x8x1xf32> to vector<4x8x16xf32>
      %39 = arith.mulf %37, %38 : vector<4x8x16xf32>
      %40 = vector.extract_strided_slice %39 {offsets = [0, 0, 0], sizes = [1, 8, 16], strides = [1, 1, 1]} : vector<4x8x16xf32> to vector<1x8x16xf32>
      %41 = vector.shape_cast %40 : vector<1x8x16xf32> to vector<8x16xf32>
      %42 = vector.extract_strided_slice %39 {offsets = [1, 0, 0], sizes = [1, 8, 16], strides = [1, 1, 1]} : vector<4x8x16xf32> to vector<1x8x16xf32>
      %43 = vector.shape_cast %42 : vector<1x8x16xf32> to vector<8x16xf32>
      %44 = vector.extract_strided_slice %39 {offsets = [2, 0, 0], sizes = [1, 8, 16], strides = [1, 1, 1]} : vector<4x8x16xf32> to vector<1x8x16xf32>
      %45 = vector.shape_cast %44 : vector<1x8x16xf32> to vector<8x16xf32>
      %46 = vector.extract_strided_slice %39 {offsets = [3, 0, 0], sizes = [1, 8, 16], strides = [1, 1, 1]} : vector<4x8x16xf32> to vector<1x8x16xf32>
      %47 = vector.shape_cast %46 : vector<1x8x16xf32> to vector<8x16xf32>
      %48 = tpu.concatenate %41, %43, %45, %47 in 1 : vector<8x16xf32>, vector<8x16xf32>, vector<8x16xf32>, vector<8x16xf32> -> vector<8x64xf32>
      %c0_41 = arith.constant 0 : index
      %c0_42 = arith.constant 0 : index
      %49 = vector.load %arg6[%c0_41, %c0_42] : memref<64x128xf32, #tpu.memory_space<vmem>>, vector<64x128xf32>
      %cst_43 = arith.constant dense<0.000000e+00> : vector<8x128xf32>
      %50 = tpu.matmul %48, %49, %cst_43 {dimension_numbers = #tpu.dot_dimension_numbers<[1], [0], [0], [1], [0, 0, 1, 1], [], []>} : vector<8x64xf32>, vector<64x128xf32>, vector<8x128xf32> -> vector<8x128xf32>
      %c0_44 = arith.constant 0 : index
      %c0_45 = arith.constant 0 : index
      %c0_46 = arith.constant 0 : index
      %51 = vector.load %arg7[%c0_44, %c0_45, %c0_46] : memref<1x8x128xf32, #tpu.memory_space<vmem>>, vector<1x8x128xf32>
      %52 = vector.shape_cast %51 : vector<1x8x128xf32> to vector<8x128xf32>
      %53 = vector.shape_cast %50 : vector<8x128xf32> to vector<1x8x128xf32>
      tpu.vector_store %arg7[%c0_44, %c0_45, %c0_46], %53 {strides = array<i32>} : memref<1x8x128xf32, #tpu.memory_space<vmem>>, vector<1x8x128xf32>,
    } else {
    }
    return
  }
  func.func @transform_0(%arg0: i32, %arg1: i32, %arg2: i32) -> (i32, i32, i32, i32) {
    %c0_i32 = arith.constant 0 : i32
    %c0_i32_0 = arith.constant 0 : i32
    %c0_i32_1 = arith.constant 0 : i32
    return %arg0, %c0_i32, %arg1, %c0_i32_0 : i32, i32, i32, i32
  }
  func.func @transform_1(%arg0: i32, %arg1: i32, %arg2: i32) -> (i32, i32, i32, i32) {
    %c0_i32 = arith.constant 0 : i32
    %c0_i32_0 = arith.constant 0 : i32
    %c0_i32_1 = arith.constant 0 : i32
    return %arg0, %c0_i32, %arg2, %c0_i32_0 : i32, i32, i32, i32
  }
  func.func @transform_2(%arg0: i32, %arg1: i32, %arg2: i32) -> (i32, i32, i32, i32) {
    %c0_i32 = arith.constant 0 : i32
    %c0_i32_0 = arith.constant 0 : i32
    %c0_i32_1 = arith.constant 0 : i32
    return %arg0, %c0_i32, %arg2, %c0_i32_0 : i32, i32, i32, i32
  }
  func.func @transform_3(%arg0: i32, %arg1: i32, %arg2: i32) -> (i32, i32) {
    %c0_i32 = arith.constant 0 : i32
    %c0_i32_0 = arith.constant 0 : i32
    %c0_i32_1 = arith.constant 0 : i32
    return %c0_i32, %c0_i32_0 : i32, i32
  }
  func.func @transform_4(%arg0: i32, %arg1: i32, %arg2: i32) -> (i32, i32, i32) {
    %c0_i32 = arith.constant 0 : i32
    %c0_i32_0 = arith.constant 0 : i32
    return %arg0, %arg1, %c0_i32 : i32, i32, i32
  }
}

</mosaic_0001>

<bundles_post_ra>
// kernel: tpu_custom_call.1
= control target key start
LH: loop header
LB: loop body
LE: loop exit
PB: predicated region body
PF: predicated region fallthrough
CT: control target
= control target key end

     0   :  { %s2232_s0 = inlined_call_operand.hbm [shape: f32[2,4,8,16], index: 0, kind: input, shape index: {}]   ;;  %s2233_s1 = inlined_call_operand.hbm [shape: f32[2,4,8,16], index: 1, kind: input, shape index: {}]   ;;  %s2234_s2 = inlined_call_operand.hbm [shape: f32[2,4,8,16], index: 2, kind: input, shape index: {}]   ;;  %s2235_s3 = inlined_call_operand.hbm [shape: f32[64,128], index: 3, kind: input, shape index: {}]   ;;  %s2236_s4 = inlined_call_operand.hbm [shape: f32[2,8,128], index: 4, kind: output, shape index: {}]  }
   0x1   :  { %2245 = sst [smem:[#allocation20_spill]] %s2232_s0 }
   0x2   :  { %2246 = sst [smem:[#allocation21_spill]] %s2233_s1 }
   0x3   :  { %9 = vsyncpa [#allocation6], 0 }
   0x4   :  { %11 = vsyncpa [#allocation6 + $0x1], 0 }
   0x5   :  { %12 = vsyncpa [#allocation9], 0 }
   0x6   :  { %14 = vsyncpa [#allocation9 + $0x1], 0 }
   0x7   :  { %15 = vsyncpa [#allocation12], 0 }
   0x8   :  { %16 = vsyncpa [#allocation7], 0 }
   0x9   :  { %18 = vsyncpa [#allocation7 + $0x1], 0  ;;  %s1875_s15 = smov 0   ;;  %s1877_s16 = smov 0  }
   0xa   :  { %s1879_s17 = smov 0   ;;  %s1881_s18 = smov 0  }
   0xb   :  { %s1883_s19 = smov 0   ;;  %s1885_s20 = smov 0  }
   0xc LB: > { %2247 = sst [smem:[#allocation18_spill]] %s1830_s19  ;;  %s43_s21 = sadd.s32 1, %s1830_s19  ;;  %s1834_s20 = sphi %s1885_s20, %s24_s20   ;;  %s1830_s19 = sphi %s1883_s19, %s2265_s19   ;;  %s1826_s18 = sphi %s1881_s18, %s2264_s18   ;;  %s1822_s17 = sphi %s1879_s17, %s2268_s17   ;;  %s1818_s16 = sphi %s1877_s16, %s2267_s16   ;;  %s1814_s15 = sphi %s1875_s15, %s2266_s15  }
   0xd   : > { %s52_s22 = sadd.s32 1, %s1822_s17  ;;  %p45_p0 = scmp.ge.s32.totalorder %s43_s21, 2 }
   0xe   : > { %p59_p1 = scmp.ne.s32.totalorder %s1822_s17, %s1818_s16  ;;  %p60_p2 = scmp.eq.s32.totalorder %s1834_s20, 0 }
   0xf   : > { %s2270_s21 = smov (%p45_p0, %s43_s21), 0  ;;  %p1549_p6 = scmp.lt.s32.totalorder %s1834_s20, 2 }
  0x10   : > { %2248 = sst [smem:[#allocation19_spill]] %s2270_s21  ;;  %p61_p3 = por %p60_p2, %p59_p1 }
  0x11   : > { %s47_s23 = ssub.s32 %s1830_s19, %s2270_s21  ;;  %s207_s24 = sand.u32 1, %s1822_s17  }
  0x12   : > { %p50_p5 = scmp.eq.s32.totalorder %s47_s23, 0  ;;  %s1921_s25 = sshll.u32 %s1830_s19, 9 }
  0x13   : > { %s1928_s27 = sshll.u32 %s207_s24, 5  ;;  %p1930_p7 = pnand %p1549_p6, %p61_p3 }
  0x14   : > { %s1924_s26 = scalar_select %p50_p5, %s1822_s17, %s52_s22  }
  0x15   : > { %s229_s29 = sand.u32 1, %s1834_s20   ;;  %s2250_s1 = sld [smem:[#allocation21_spill]] }
  0x16   : > { %s233_s7 = scalar_lea.vmem [#allocation8], %s1928_s27  ;;  %s1940_s9 = scalar_lea.sflag [#allocation9], %s229_s29 }
  0x17   : > { %s241_s8 = sshll.u32 %s233_s7, 4  ;;  %p2244_p8 = pneg %p1930_p7  ;;  %s242_s8 = int_to_ptr.vmem [resolvable:$true] %s241_s8 }
  0x18   : > { %s1649_s10 = scalar_lea.vmem %s242_s8, 512  ;;  %s1836_s11 = smov [#allocation8]  }
  0x19   : > { %p1650_p9 = scmp.ne.s32.totalorder %s242_s8, %s1649_s10  ;;  %s1654_s12 = sshll.u32 %s1836_s11, 4  ;;  %s1655_s12 = int_to_ptr.vmem [resolvable:$false] %s1654_s12 }
  0x1a   : > { %s1656_s13 = scalar_lea.vmem %s1655_s12, 1024  ;;  %p1657_p12 = scmp.lt.s32.totalorder %s242_s8, %s1655_s12 }
  0x1b   : > { %s240_s6 = scalar_lea.hbm %s2250_s1, %s1921_s25  ;;  %p1652_p10 = pnand %p1650_p9, %p2244_p8 }
  0x1c   : > { %p1658_p13 = scmp.lt.s32.totalorder %s1656_s13, %s1649_s10 }
  0x1d   : > { %p1653_p11 = pneg %p1652_p10 }
  0x1e   : > { %p1659_p0 = por %p1658_p13, %p1657_p12 }
  0x20   : > { %p1660_p2 = pnand %p1659_p0, %p1653_p11 }
  0x22   : > { %1663 = shalt.err (!%p1660_p2)
}
  0x23   : > { %s2237_s14 = smov 128   ;;  %s2239_s22 = smov 8  }
  0x24   : > { %1540 = dma.hbm_to_vmem [thread:$0]  (!%p1930_p7), %s240_s6, 512, %s242_s8, %s1940_s9, %s2237_s14, %s2237_s14, %s2239_s22  }
  0x25   : > { %s1954_s23 = sadd.s32 4294967295, %s1834_s20   ;;  %s1395_s29 = sadd.s32 4294967294, %s1834_s20  }
  0x26   : > { %p65_p3 = scmp.ne.s32.totalorder %s1818_s16, %s1814_s15  ;;  %p2243_p5 = scmp.eq.s32.totalorder %s1954_s23, 0 }
  0x27   : > { %p168_p6 = scmp.eq.s32.totalorder %s1954_s23, 1  ;;  %p174_p9 = scmp.eq.s32.totalorder %s1395_s29, 1 }
  0x28   : > { %p1396_p10 = scmp.ge.s32.totalorder %s1834_s20, 1  ;;  %p1964_p11 = por %p2243_p5, %p65_p3 }
  0x29   : > { %p1971_p12 = por %p168_p6, %p59_p1  ;;  %p1975_p13 = por %p174_p9, %p65_p3 }
  0x2a   : > { %p181_p0 = scmp.lt.s32.totalorder %s1834_s20, 3  ;;  %s1839_s8 = smov [#allocation11]  }
  0x2b   : > { %s2253_s6 = scalar_select %p1975_p13, 1, 0 }
  0x2c   : > { %p1980_p2 = pnand %p1396_p10, %p181_p0  ;;  %s193_s10 = sshll.u32 %s1839_s8, 4  ;;  %s1984_s10 = int_to_ptr.vmem [resolvable:$true] %s193_s10 }
  0x2d   : > { %s2255_s0 = sld [smem:[#allocation20_spill]]  ;;  %s211_s29 = scalar_lea.vmem [#allocation5], %s1928_s27 }
  0x2e   : > { %p1530_p1 = pneg %p1980_p2  ;;  %s219_s14 = sshll.u32 %s211_s29, 4  ;;  %s220_s14 = int_to_ptr.vmem [resolvable:$true] %s219_s14 }
  0x2f   : > { %s208_s1 = scalar_lea.sflag [#allocation6], %s207_s24  ;;  %s1677_s21 = scalar_lea.vmem %s220_s14, 512 }
  0x30   : > { %p1995_p3 = pnand %p1530_p1, %p2243_p5  ;;  %p1678_p6 = scmp.ne.s32.totalorder %s220_s14, %s1677_s21 }
  0x31   : > { %s1840_s8 = smov [#allocation5]  }
  0x32   : > { %p1680_p9 = pnand %p1678_p6, %p2244_p8  ;;  %s1682_s19 = sshll.u32 %s1840_s8, 4  ;;  %s1683_s19 = int_to_ptr.vmem [resolvable:$false] %s1682_s19 }
  0x33   : > { %s218_s13 = scalar_lea.hbm %s2255_s0, %s1921_s25  ;;  %s1684_s11 = scalar_lea.vmem %s1683_s19, 1024 }
  0x34   : > { %p1681_p10 = pneg %p1680_p9  ;;  %p1685_p0 = scmp.lt.s32.totalorder %s220_s14, %s1683_s19 }
  0x35   : > { %p1686_p4 = scmp.lt.s32.totalorder %s1684_s11, %s1677_s21 }
  0x37   : > { %p1687_p13 = por %p1686_p4, %p1685_p0 }
  0x39   : > { %p1688_p1 = pnand %p1687_p13, %p1681_p10 }
  0x3b   : > { %1691 = shalt.err (!%p1688_p1)
}
  0x3c   : > { %s2257_s12 = smov 8   ;;  %s2258_s29 = smov 128  }
  0x3d   : > { %1537 = dma.hbm_to_vmem [thread:$0]  (!%p1930_p7), %s218_s13, 512, %s220_s14, %s208_s1, %s2258_s29, %s2258_s29, %s2257_s12  }
  0x3e   : > { %p1694_p6 = pneg %p1995_p3  ;;  %s1703_s24 = scalar_lea.vmem %s1984_s10, 1024 }
  0x3f   : > { %p1704_p9 = scmp.ne.s32.totalorder %s1984_s10, %s1703_s24  ;;  %p1711_p4 = scmp.lt.s32.totalorder %s1984_s10, %s1984_s10 }
  0x40   : > { %p1712_p13 = scmp.lt.s32.totalorder %s1703_s24, %s1703_s24 }
  0x41   : > { %p1706_p5 = pnand %p1704_p9, %p1694_p6 }
  0x42   : > { %p1713_p10 = por %p1712_p13, %p1711_p4 }
  0x43   : > { %p1707_p8 = pneg %p1706_p5 }
  0x45   : > { %p1714_p0 = pnand %p1713_p10, %p1707_p8 }
  0x47   : > { %1717 = shalt.err (!%p1714_p0)
}
  0x48   : > { %1533 = dma.hbm_to_vmem [thread:$0]  (!%p1995_p3), %s2235_s3, 1024, %s1984_s10, [#allocation12], %s2258_s29, %s2258_s29, %s2257_s12  }
  0x49   : > { %s262_s13 = scalar_lea.hbm %s2234_s2, %s1921_s25  ;;  %s255_s8 = scalar_lea.vmem [#allocation10], %s1928_s27 }
  0x4a   : > { %s263_s11 = sshll.u32 %s255_s8, 4  ;;  %p2259_p5 = pneg %p1930_p7  ;;  %s264_s11 = int_to_ptr.vmem [resolvable:$true] %s263_s11 }
  0x4b   : > { %s1731_s24 = scalar_lea.vmem %s264_s11, 512  ;;  %s1841_s22 = smov [#allocation10]  }
  0x4c   : > { %p1732_p8 = scmp.ne.s32.totalorder %s264_s11, %s1731_s24  ;;  %s1736_s0 = sshll.u32 %s1841_s22, 4  ;;  %s1737_s0 = int_to_ptr.vmem [resolvable:$false] %s1736_s0 }
  0x4d   : > { %s1738_s19 = scalar_lea.vmem %s1737_s0, 1024  ;;  %p1739_p9 = scmp.lt.s32.totalorder %s264_s11, %s1737_s0 }
  0x4e   : > { %p1734_p1 = pnand %p1732_p8, %p2259_p5  ;;  %p1740_p4 = scmp.lt.s32.totalorder %s1738_s19, %s1731_s24 }
  0x50   : > { %p1735_p6 = pneg %p1734_p1  ;;  %p1741_p3 = por %p1740_p4, %p1739_p9 }
  0x52   : > { %p1742_p13 = pnand %p1741_p3, %p1735_p6 }
  0x54   : > { %1745 = shalt.err (!%p1742_p13)
}
  0x55   : > { %1543 = dma.hbm_to_vmem [thread:$0]  (!%p1930_p7), %s262_s13, 512, %s264_s11, %s1940_s9, %s2258_s29, %s2258_s29, %s2257_s12  }
  0x56   : > { %275 = sbr.rel (%p1980_p2) target bundleno = 1204 (0x4b4), region = 36  ;;  %s2041_s25 = sand.u32 (!%p1980_p2), 1, %s1818_s16  }
  0x57   : > { %s1409_s0 = sshll.u32 (!%p1980_p2), %s2041_s25, 5  ;;  %s278_s27 = scalar_lea.sflag (!%p1980_p2), [#allocation6], %s2041_s25 }
  0x58   : > { %s2045_s10 = scalar_lea.vmem (!%p1980_p2), [#allocation5], %s1409_s0 }
  0x5b   : > { %1797 = dma.done.wait (%p1964_p11), %s278_s27, 512  }
  0x5c   : > { %1799 = vsyncadd (%p1964_p11), %s278_s27, 4294966784  ;;  %s286_s28 = sand.u32 1, %s1954_s23   ;;  %s2052_s7 = scalar_lea.vmem [#allocation8], %s1409_s0 }
  0x5d   : > { %s287_s9 = scalar_lea.sflag [#allocation9], %s286_s28 }
  0x5e   : > { %1801 = dma.done.wait (%p1964_p11), %s287_s9, 1024  }
  0x5f   : > { %1803 = vsyncadd (%p1964_p11), %s287_s9, 4294966272  ;;  %s2058_s12 = scalar_lea.vmem [#allocation10], %s1409_s0  ;;  %p2260_p7 = scmp.eq.s32.totalorder %s1954_s23, 0 }
  0x61   : > { %1805 = dma.done.wait (%p2260_p7), [#allocation12], 1024   ;;  %p2261_p2 = pmov %p2260_p7 }
  0x62   : > { %vm351_vm0 = vcmask 130048   ;;  %v1842_v0 = vmov 0.0   ;;  %vm1843_vm1 = vmmov 0   ;;  %v360_v1 = vld [vmem:[%s2052_s7] sm:$0xff]  ;;  %v361_v3 = vld [vmem:[%s2052_s7 + $0x8] sm:$0xff]  ;;  %v362_v5 = vld [vmem:[%s2052_s7 + $0x10] sm:$0xff] }
  0x63   : > { %1807 = vsyncadd (%p2261_p2), [#allocation12], 4294966272  ;;  %1459 = vmatprep.subr.mxu1 %v1842_v0  ;;  %352 = vst.msk [vmem:[#allocation4] sm:$0xff] %vm351_vm0, %v1842_v0  ;;  %1461 = vmatprep.mubr.msk.f32.mxu1 %vm1843_vm1, %v1842_v0  ;;  %v356_v2 = vld [vmem:[%s2045_s10] sm:$0xff]  ;;  %v357_v4 = vld [vmem:[%s2045_s10 + $0x8] sm:$0xff]  ;;  %vm342_vm2 = vcmask 7168  }
  0x64   : > { %353 = vst.msk [vmem:[#allocation4 + $0x8] sm:$0xff] %vm351_vm0, %v1842_v0  ;;  %354 = vst.msk [vmem:[#allocation4 + $0x10] sm:$0xff] %vm351_vm0, %v1842_v0  ;;  %1479 = vmatprep.subr.mxu0 %v1842_v0  ;;  %1481 = vmatprep.mubr.msk.f32.mxu0 %vm1843_vm1, %v1842_v0  ;;  %v358_v6 = vld [vmem:[%s2045_s10 + $0x10] sm:$0xff]  ;;  %v363_v7 = vld [vmem:[%s2052_s7 + $0x18] sm:$0xff]  ;;  %v1844_v9 = vmov -inf   ;;  %vm677_vm3 = vcmask 64512  }
  0x65   : > { %355 = vst.msk [vmem:[#allocation4 + $0x18] sm:$0xff] %vm351_vm0, %v1842_v0  ;;  %1460 = vmatpush3.xpose.msk.msra.mxu1 %vm351_vm0, %v360_v1  ;;  %v359_v8 = vld [vmem:[%s2045_s10 + $0x18] sm:$0xff]  ;;  %v1845_v21 = vmov 0   ;;  %v364_v39 = vld [vmem:[%s2058_s12] sm:$0xff]  ;;  %v365_v40 = vld [vmem:[%s2058_s12 + $0x8] sm:$0xff]  ;;  %s1846_s23 = smov 16  }
  0x66   : > { %1464 = vmatprep.subr.mxu1 %v1842_v0  ;;  %343 = vst.msk [vmem:[#allocation2] sm:$0xff] %vm342_vm2, %v1844_v9  ;;  %344 = vst.msk [vmem:[#allocation2 + $0x8] sm:$0xff] %vm342_vm2, %v1844_v9  ;;  %1610 = vset.pattern.permute.xlu0 %v1845_v21  ;;  %v366_v53 = vld [vmem:[%s2058_s12 + $0x10] sm:$0xff]  ;;  %v367_v55 = vld [vmem:[%s2058_s12 + $0x18] sm:$0xff]  ;;  %s1847_s30 = smov 32   ;;  %s1848_s29 = smov 48  }
  0x67   : > { %345 = vst.msk [vmem:[#allocation2 + $0x10] sm:$0xff] %vm342_vm2, %v1844_v9  ;;  %346 = vst.msk [vmem:[#allocation2 + $0x18] sm:$0xff] %vm342_vm2, %v1844_v9  ;;  %1611 = vset.pattern.permute.xlu1 %v1845_v21  ;;  %1480 = vmatpush3.msra.mxu0 %v364_v39  ;;  %vm1151_vm4 = vcmask 261120   ;;  %vm1153_vm5 = vcmask 392192   ;;  %vm1163_vm6 = vcmask 523264   ;;  %s1413_s1 = sshll.u32 %s2041_s25, 3 }
  0x68   : > { %1462 = vmatmul.mubr.msk.f32.vlgmr.msra.gmra.mxu1 %vm351_vm0, %v356_v2  ;;  %347 = vst.msk [vmem:[#allocation3] sm:$0xff] %vm342_vm2, %v1842_v0  ;;  %348 = vst.msk [vmem:[#allocation3 + $0x8] sm:$0xff] %vm342_vm2, %v1842_v0  ;;  %1489 = vmatprep.subr.mxu0 %v1842_v0  ;;  %s337_s21 = scalar_lea.vmem [#allocation13], %s1413_s1  ;;  %s1428_s13 = sshll.u32 %s1826_s18, 7 }
  0x69   : > { %1465 = vmatpush3.xpose.msk.msra.mxu1 %vm351_vm0, %v361_v3  ;;  %1466 = vmatprep.mubr.msk.f32.mxu1 %vm1843_vm1, %v1842_v0  ;;  %349 = vst.msk [vmem:[#allocation3 + $0x10] sm:$0xff] %vm342_vm2, %v1842_v0  ;;  %350 = vst.msk [vmem:[#allocation3 + $0x18] sm:$0xff] %vm342_vm2, %v1842_v0  ;;  %s1253_s14 = sshll.u32 %s337_s21, 4  ;;  %s2186_s24 = scalar_lea.hbm %s2236_s4, %s1428_s13  ;;  %s2181_s14 = int_to_ptr.vmem [resolvable:$true] %s1253_s14 }
  0x6a   : > { %1469 = vmatprep.subr.mxu1 %v1842_v0  ;;  %s1239_s22 = scalar_lea.sflag [#allocation7], %s2041_s25  ;;  %s1746_s19 = scalar_lea.vmem %s2181_s14, 128 }
  0x6b   : > { %p1747_p11 = scmp.ne.s32.totalorder %s2181_s14, %s1746_s19  ;;  %s1849_s18 = smov [#allocation13]  }
  0x6c   : > { %1467 = vmatmul.mubr.msk.f32.vlgmr.msra.gmra.mxu1 %vm351_vm0, %v357_v4  ;;  %s1750_s0 = sshll.u32 %s1849_s18, 4  ;;  %s1751_s0 = int_to_ptr.vmem [resolvable:$false] %s1750_s0 }
  0x6d   : > { %1470 = vmatpush3.xpose.msk.msra.mxu1 %vm351_vm0, %v362_v5  ;;  %1471 = vmatprep.mubr.msk.f32.mxu1 %vm1843_vm1, %v1842_v0  ;;  %v2122_v23 = vld [vmem:[#allocation2] sm:$0xff]  ;;  %v2127_v26 = vld [vmem:[#allocation2 + $0x8] sm:$0xff]  ;;  %p1748_p10 = pnand %p1747_p11, %p1971_p12  ;;  %s1752_s27 = scalar_lea.vmem %s1751_s0, 256 }
  0x6e   : > { %1474 = vmatprep.subr.mxu1 %v1842_v0  ;;  %v675_v30 = vld [vmem:[#allocation2 + $0x10] sm:$0xff]  ;;  %v676_v34 = vld [vmem:[#allocation2 + $0x18] sm:$0xff]  ;;  %p1753_p8 = scmp.lt.s32.totalorder %s2181_s14, %s1751_s0  ;;  %p1754_p5 = scmp.lt.s32.totalorder %s1752_s27, %s1746_s19 }
  0x6f   : > { %p1749_p0 = pneg %p1748_p10 }
  0x70   : > { %1472 = vmatmul.mubr.msk.f32.vlgmr.msra.gmra.mxu1 %vm351_vm0, %v358_v6  ;;  %p1755_p1 = por %p1754_p5, %p1753_p8 }
  0x71   : > { %1475 = vmatpush3.xpose.msk.msra.mxu1 %vm351_vm0, %v363_v7  ;;  %1476 = vmatprep.mubr.msk.f32.mxu1 %vm1843_vm1, %v1842_v0  ;;  %v739_v7 = vld [vmem:[#allocation3 + $0x8] sm:$0xff] }
  0x72   : > { %1484 = vmatprep.subr.mxu1 %v1842_v0  ;;  %p1756_p6 = pnand %p1755_p1, %p1749_p0 }
  0x74   : > { %1477 = vmatmul.mubr.msk.f32.vlgmr.msra.gmra.mxu1 %vm351_vm0, %v359_v8 }
  0x75   : > { %1486 = vmatprep.mubr.msk.f32.mxu1 %vm1843_vm1, %v1842_v0  ;;  %1485 = vmatpush3.msra.mxu1 %v365_v40  ;;  %v769_v40 = vld [vmem:[#allocation4 + $0x10] sm:$0xff] }
  0x76   : > { %1494 = vmatprep.subr.mxu1 %v1842_v0 }
 0x128   : > { %v441_v10 = vpop.f32.mrf.mxu1 }
 0x129   : > { %v678_v11 = vsel %vm677_vm3, %v441_v10, -inf }
 0x12a   : > { %679 = vmax.xlane.f32.xlu0 %v678_v11  ;;  %v1463_v12 = vpop.f32.mrf.mxu1 }
 0x12c   : > { %v517_v13 = vpop.f32.mrf.mxu1 }
 0x12d   : > { %v681_v14 = vsel %vm677_vm3, %v517_v13, -inf }
 0x12e   : > { %682 = vmax.xlane.f32.xlu0 %v681_v14  ;;  %v1468_v15 = vpop.f32.mrf.mxu1  ;;  %v741_v14 = vld [vmem:[#allocation3 + $0x18] sm:$0xff] }
 0x130   : > { %v593_v16 = vpop.f32.mrf.mxu1 }
 0x131   : > { %v684_v17 = vsel %vm677_vm3, %v593_v16, -inf }
 0x132   : > { %685 = vmax.xlane.f32.xlu1 %v684_v17  ;;  %v1473_v18 = vpop.f32.mrf.mxu1 }
 0x134   : > { %v669_v19 = vpop.f32.mrf.mxu1 }
 0x135   : > { %v687_v20 = vsel %vm677_vm3, %v669_v19, -inf }
 0x136   : > { %688 = vmax.xlane.f32.xlu1 %v687_v20  ;;  %v1478_v22 = vpop.f32.mrf.mxu1 }
 0x1b3   : > { %v680_v24 = vpop.xlane.xlu0 %679 }
 0x1b4   : > { %v2125_v25 = vmax.f32 %v2122_v23, %v680_v24 }
 0x1b6   : > { %v694_v27 = vsub.f32 %v2122_v23, %v2125_v25  ;;  %1095 = vst.msk [vmem:[#allocation2] sm:$0xff] %vm342_vm2, %v2125_v25  ;;  %708 = vperm.xlu0 %1610, %v2125_v25  }
 0x1b7   : > { %v683_v28 = vpop.xlane.xlu0 %682 }
 0x1b8   : > { %v691_v29 = vmax.f32 %v2127_v26, %v683_v28  ;;  %v698_v6 = vmul.f32 1.442695, %v694_v27 }
 0x1ba   : > { %v695_v31 = vsub.f32 %v2127_v26, %v691_v29  ;;  %1096 = vst.msk [vmem:[#allocation2 + $0x8] sm:$0xff] %vm342_vm2, %v691_v29  ;;  %713 = vperm.xlu1 %1611, %v691_v29  }
 0x1bb   : > { %v686_v32 = vpop.xlane.xlu1 %685 }
 0x1bc   : > { %v692_v33 = vmax.f32 %v675_v30, %v686_v32  ;;  %v700_v63 = vmul.f32 1.442695, %v695_v31  ;;  %v1162_v32 = vld [vmem:[#allocation11 + $0x38] sm:$0xff] }
 0x1be   : > { %v696_v35 = vsub.f32 %v675_v30, %v692_v33  ;;  %1097 = vst.msk [vmem:[#allocation2 + $0x10] sm:$0xff] %vm342_vm2, %v692_v33  ;;  %718 = vperm.xlu1 %1611, %v692_v33   ;;  %v1161_v33 = vld [vmem:[#allocation11 + $0x30] sm:$0xff] }
 0x1bf   : > { %v689_v36 = vpop.xlane.xlu1 %688 }
 0x1c0   : > { %v693_v37 = vmax.f32 %v676_v34, %v689_v36  ;;  %v702_v62 = vmul.f32 1.442695, %v696_v35  ;;  %v768_v35 = vld [vmem:[#allocation4 + $0x8] sm:$0xff] }
 0x1c2   : > { %v697_v38 = vsub.f32 %v676_v34, %v693_v37  ;;  %1098 = vst.msk [vmem:[#allocation2 + $0x18] sm:$0xff] %vm342_vm2, %v693_v37  ;;  %723 = vperm.xlu1 %1611, %v693_v37   ;;  %v1160_v34 = vld [vmem:[#allocation11 + $0x28] sm:$0xff] }
 0x1c4   : > { %v704_v2 = vmul.f32 1.442695, %v697_v38 }
 0x231   : > { %v709_v41 = vpop.permute.xlu0 %708 }
 0x232   : > { %v726_v42 = vsub.f32 %v441_v10, %v709_v41  ;;  %v740_v10 = vld [vmem:[#allocation3 + $0x10] sm:$0xff] }
 0x234   : > { %v730_v43 = vmul.f32 1.442695, %v726_v42 }
 0x235   : > { %v714_v44 = vpop.permute.xlu1 %713 }
 0x236   : > { %1612 = vpow2.f32 %v730_v43  ;;  %v727_v45 = vsub.f32 %v517_v13, %v714_v44 }
 0x238   : > { %v732_v46 = vmul.f32 1.442695, %v727_v45 }
 0x239   : > { %v719_v47 = vpop.permute.xlu1 %718 }
 0x23a   : > { %1614 = vpow2.f32 %v732_v46  ;;  %v728_v48 = vsub.f32 %v593_v16, %v719_v47  ;;  %v770_v46 = vld [vmem:[#allocation4 + $0x18] sm:$0xff] }
 0x23c   : > { %v734_v49 = vmul.f32 1.442695, %v728_v48 }
 0x23d   : > { %v724_v50 = vpop.permute.xlu1 %723 }
 0x23e   : > { %1616 = vpow2.f32 %v734_v49  ;;  %v729_v51 = vsub.f32 %v669_v19, %v724_v50  ;;  %v738_v19 = vld [vmem:[#allocation3] sm:$0xff] }
 0x240   : > { %v736_v52 = vmul.f32 1.442695, %v729_v51 }
 0x242   : > { %1618 = vpow2.f32 %v736_v52 }
 0x243   : > { %v1613_v54 = vpop.eup %1612  ;;  %1620 = vpow2.f32 %v702_v62 }
 0x244   : > { %1482 = vmatmul.mubr.msk.f32.vlgmr.msra.gmra.mxu0 %vm677_vm3, %v1613_v54  ;;  %v746_v1 = vsel %vm677_vm3, %v1613_v54, 0.0  ;;  %1622 = vpow2.f32 %v700_v63 }
 0x245   : > { %1490 = vmatpush3.msra.mxu0 %v366_v53  ;;  %1491 = vmatprep.mubr.msk.f32.mxu0 %vm1843_vm1, %v1842_v0  ;;  %1624 = vpow2.f32 %v704_v2 }
 0x246   : > { %1499 = vmatprep.subr.mxu0 %v1842_v0  ;;  %1626 = vpow2.f32 %v698_v6 }
 0x247   : > { %v1615_v56 = vpop.eup %1614 }
 0x248   : > { %1487 = vmatmul.mubr.msk.f32.vlgmr.msra.gmra.mxu1 %vm677_vm3, %v1615_v56  ;;  %v749_v57 = vsel %vm677_vm3, %v1615_v56, 0.0  ;;  %v1158_v56 = vld [vmem:[#allocation11 + $0x18] sm:$0xff] }
 0x249   : > { %750 = vadd.xlane.f32.xlu1 %v749_v57  ;;  %1495 = vmatpush3.msra.mxu1 %v367_v55  ;;  %v1159_v55 = vld [vmem:[#allocation11 + $0x20] sm:$0xff]  ;;  %v1157_v57 = vld [vmem:[#allocation11 + $0x10] sm:$0xff] }
 0x24a   : > { %1496 = vmatprep.mubr.msk.f32.mxu1 %vm1843_vm1, %v1842_v0 }
 0x24b   : > { %v1617_v58 = vpop.eup %1616 }
 0x24c   : > { %1492 = vmatmul.mubr.msk.f32.vlgmr.msra.gmra.mxu0 %vm677_vm3, %v1617_v58  ;;  %v752_v59 = vsel %vm677_vm3, %v1617_v58, 0.0  ;;  %v1156_v58 = vld [vmem:[#allocation11 + $0x8] sm:$0xff] }
 0x24d   : > { %753 = vadd.xlane.f32.xlu0 %v752_v59  ;;  %1515 = vmatprep.mubr.msk.f32.mxu0 %vm1843_vm1, %v1842_v0  ;;  %v1155_v59 = vld [vmem:[#allocation11] sm:$0xff] }
 0x24e   : > { %1500 = vmatpush3.msra.mxu0 %v1162_v32 }
 0x24f   : > { %v1619_v60 = vpop.eup %1618  ;;  %1501 = vmatprep.subr.mxu0 %v1842_v0 }
 0x250   : > { %1497 = vmatmul.mubr.msk.f32.vlgmr.msra.gmra.mxu1 %vm677_vm3, %v1619_v60  ;;  %v755_v61 = vsel %vm677_vm3, %v1619_v60, 0.0  ;;  %v1621_v3 = vpop.eup %1620  ;;  %1502 = vmatpush3.msra.mxu0 %v1161_v33 }
 0x251   : > { %756 = vadd.xlane.f32.xlu1 %v755_v61  ;;  %v1623_v4 = vpop.eup %1622  ;;  %v744_v12 = vmul.f32 %v1621_v3, %v740_v10  ;;  %1503 = vmatprep.subr.mxu0 %v1842_v0 }
 0x252   : > { %v1625_v5 = vpop.eup %1624  ;;  %v743_v8 = vmul.f32 %v1623_v4, %v739_v7  ;;  %1504 = vmatpush3.msra.mxu0 %v1160_v34 }
 0x253   : > { %v745_v16 = vmul.f32 %v1625_v5, %v741_v14  ;;  %v1627_v17 = vpop.eup %1626  ;;  %1505 = vmatprep.subr.mxu0 %v1842_v0 }
 0x254   : > { %v742_v22 = vmul.f32 %v1627_v17, %v738_v19  ;;  %1506 = vmatpush3.msra.mxu0 %v1159_v55 }
 0x255   : > { %747 = vadd.xlane.f32.xlu1 %v746_v1  ;;  %1507 = vmatprep.subr.mxu0 %v1842_v0 }
 0x256   : > { %1508 = vmatpush3.msra.mxu0 %v1158_v56 }
 0x257   : > { %1509 = vmatprep.subr.mxu0 %v1842_v0 }
 0x258   : > { %1510 = vmatpush3.msra.mxu0 %v1157_v57 }
 0x259   : > { %1511 = vmatprep.subr.mxu0 %v1842_v0 }
 0x25a   : > { %1512 = vmatpush3.msra.mxu0 %v1156_v58 }
 0x25b   : > { %1513 = vmatprep.subr.mxu0 %v1842_v0 }
 0x25c   : > { %1514 = vmatpush3.msra.mxu0 %v1155_v59 }
 0x263   : > { %783 = vperm.xlu0 %1610, %v1621_v3   ;;  %v767_v3 = vld [vmem:[#allocation4] sm:$0xff] }
 0x266   : > { %778 = vperm.xlu1 %1611, %v1623_v4  }
 0x26a   : > { %788 = vperm.xlu1 %1611, %v1625_v5  }
 0x2d2   : > { %v751_v9 = vpop.xlane.xlu1 %750 }
 0x2d3   : > { %v759_v11 = vadd.f32 %v751_v9, %v743_v8 }
 0x2d5   : > { %764 = vst.msk [vmem:[#allocation3 + $0x8] sm:$0xff] %vm342_vm2, %v759_v11 }
 0x2d6   : > { %v754_v13 = vpop.xlane.xlu0 %753 }
 0x2d7   : > { %v760_v15 = vadd.f32 %v754_v13, %v744_v12 }
 0x2d9   : > { %765 = vst.msk [vmem:[#allocation3 + $0x10] sm:$0xff] %vm342_vm2, %v760_v15 }
 0x2da   : > { %v757_v18 = vpop.xlane.xlu1 %756 }
 0x2db   : > { %v761_v20 = vadd.f32 %v757_v18, %v745_v16 }
 0x2dc   : > { %v1103_v21 = vld [vmem:[#allocation3 + $0x8] sm:$0xff] }
 0x2dd   : > { %766 = vst.msk [vmem:[#allocation3 + $0x18] sm:$0xff] %vm342_vm2, %v761_v20  ;;  %1628 = vrcp.f32 %v1103_v21 }
 0x2de   : > { %v748_v23 = vpop.xlane.xlu1 %747  ;;  %v784_v41 = vpop.permute.xlu0 %783 }
 0x2df   : > { %v758_v24 = vadd.f32 %v748_v23, %v742_v22  ;;  %v793_v45 = vmul.f32 %v784_v41, %v769_v40 }
 0x2e0   : > { %v1104_v25 = vld [vmem:[#allocation3 + $0x10] sm:$0xff] }
 0x2e1   : > { %763 = vst.msk [vmem:[#allocation3] sm:$0xff] %vm342_vm2, %v758_v24  ;;  %1630 = vrcp.f32 %v1104_v25 }
 0x2e2   : > { %v779_v36 = vpop.permute.xlu1 %778 }
 0x2e3   : > { %v792_v39 = vmul.f32 %v779_v36, %v768_v35 }
 0x2e4   : > { %v1105_v26 = vld [vmem:[#allocation3 + $0x18] sm:$0xff] }
 0x2e5   : > { %1632 = vrcp.f32 %v1105_v26 }
 0x2e6   : > { %v789_v47 = vpop.permute.xlu1 %788 }
 0x2e7   : > { %v794_v51 = vmul.f32 %v789_v47, %v770_v46 }
 0x2e8   : > { %v1102_v27 = vld [vmem:[#allocation3] sm:$0xff] }
 0x2e9   : > { %1634 = vrcp.f32 %v1102_v27 }
 0x2ea   : > { %v1629_v28 = vpop.eup %1628 }
 0x2eb   : > { %1121 = vperm.xlu1 %1611, %v1629_v28  }
 0x2ee   : > { %v1631_v29 = vpop.eup %1630 }
 0x2ef   : > { %1126 = vperm.xlu1 %1611, %v1631_v29  }
 0x2f2   : > { %v1633_v30 = vpop.eup %1632 }
 0x2f3   : > { %1131 = vperm.xlu0 %1610, %v1633_v30   ;;  %773 = vperm.xlu1 %1611, %v1627_v17  }
 0x2f6   : > { %v1635_v31 = vpop.eup %1634 }
 0x2f7   : > { %1116 = vperm.xlu0 %1610, %v1635_v31  }
 0x304   : > { %v864_v37 = vpop.f32.mrf.mxu0 }
 0x306   : > { %v1483_v38 = vpop.f32.mrf.mxu0 }
 0x308   : > { %v937_v42 = vpop.f32.mrf.mxu1 }
 0x309   : > { %v1088_v43 = vadd.f32 %v937_v42, %v792_v39 }
 0x30a   : > { %v1488_v44 = vpop.f32.mrf.mxu1 }
 0x30b   : > { %1092 = vst.msk [vmem:[#allocation4 + $0x8] sm:$0xff] %vm351_vm0, %v1088_v43 }
 0x30c   : > { %v1010_v48 = vpop.f32.mrf.mxu0 }
 0x30d   : > { %v1089_v49 = vadd.f32 %v1010_v48, %v793_v45 }
 0x30e   : > { %v1493_v50 = vpop.f32.mrf.mxu0 }
 0x30f   : > { %1093 = vst.msk [vmem:[#allocation4 + $0x10] sm:$0xff] %vm351_vm0, %v1089_v49 }
 0x310   : > { %v1083_v52 = vpop.f32.mrf.mxu1 }
 0x311   : > { %v1090_v53 = vadd.f32 %v1083_v52, %v794_v51 }
 0x312   : > { %v1498_v54 = vpop.f32.mrf.mxu1  ;;  %v1111_v60 = vld [vmem:[#allocation4 + $0x8] sm:$0xff] }
 0x313   : > { %1094 = vst.msk [vmem:[#allocation4 + $0x18] sm:$0xff] %vm351_vm0, %v1090_v53 }
 0x316   : > { %v1112_v1 = vld [vmem:[#allocation4 + $0x10] sm:$0xff] }
 0x31a   : > { %v1113_v4 = vld [vmem:[#allocation4 + $0x18] sm:$0xff] }
 0x366   : > { %v1122_v61 = vpop.permute.xlu1 %1121 }
 0x367   : > { %v1135_v62 = vmul.f32 %v1122_v61, %v1111_v60 }
 0x369   : > { %1139 = vrot.lane.b32.xlu1 %v1135_v62, %s1846_s23 }
 0x36a   : > { %v1127_v63 = vpop.permute.xlu1 %1126 }
 0x36b   : > { %v1136_v2 = vmul.f32 %v1127_v63, %v1112_v1 }
 0x36d   : > { %1143 = vrot.lane.b32.xlu0 %v1136_v2, %s1847_s30 }
 0x36e   : > { %v1132_v5 = vpop.permute.xlu0 %1131  ;;  %v774_v6 = vpop.permute.xlu1 %773 }
 0x36f   : > { %v1137_v7 = vmul.f32 %v1132_v5, %v1113_v4  ;;  %v791_v8 = vmul.f32 %v774_v6, %v767_v3 }
 0x371   : > { %v1087_v9 = vadd.f32 %v864_v37, %v791_v8  ;;  %1147 = vrot.lane.b32.xlu1 %v1137_v7, %s1848_s29 }
 0x372   : > { %v1117_v0 = vpop.permute.xlu0 %1116 }
 0x373   : > { %1091 = vst.msk [vmem:[#allocation4] sm:$0xff] %vm351_vm0, %v1087_v9 }
 0x37a   : > { %v1110_v10 = vld [vmem:[#allocation4] sm:$0xff] }
 0x37b   : > { %v1134_v12 = vmul.f32 %v1117_v0, %v1110_v10 }
 0x3db   : > { %v1140_v11 = vpop.permute.xlu1 %1139 }
 0x3dc   : > { %v1150_v14 = vsel %vm351_vm0, %v1134_v12, %v1140_v11 }
 0x3df   : > { %v1144_v13 = vpop.permute.xlu0 %1143 }
 0x3e0   : > { %v1152_v15 = vsel %vm1151_vm4, %v1150_v14, %v1144_v13 }
 0x3e3   : > { %v1148_v16 = vpop.permute.xlu1 %1147 }
 0x3e4   : > { %v1154_v17 = vsel %vm1153_vm5, %v1152_v15, %v1148_v16 }
 0x3e5   : > { %1516 = vmatmul.mubr.msk.f32.vlgmr.msra.gmra.mxu0 %vm1163_vm6, %v1154_v17 }
 0x4a5   : > { %v1233_v18 = vpop.f32.mrf.mxu0 }
 0x4a6   : > { %1237 = vst [vmem:[%s337_s21] sm:$0xff] %v1233_v18 }
 0x4a7   : > { %v1517_v19 = vpop.f32.mrf.mxu0 }
 0x4a8   : > { %1759 = shalt.err (!%p1756_p6)
}
 0x4a9   : > { %s1760_s10 = scalar_lea.hbm %s2186_s24, 128  ;;  %s1764_s9 = scalar_lea.hbm %s2236_s4, 256 }
 0x4aa   : > { %p1761_p9 = scmp.ne.s32.totalorder %s2186_s24, %s1760_s10  ;;  %p1765_p13 = scmp.lt.s32.totalorder %s2186_s24, %s2236_s4 }
 0x4ab   : > { %p1766_p7 = scmp.lt.s32.totalorder %s1764_s9, %s1760_s10 }
 0x4ac   : > { %p1762_p4 = pnand %p1761_p9, %p1971_p12 }
 0x4ad   : > { %p1767_p2 = por %p1766_p7, %p1765_p13 }
 0x4ae   : > { %p1763_p3 = pneg %p1762_p4 }
 0x4b0   : > { %p1768_p11 = pnand %p1767_p2, %p1763_p3 }
 0x4b2   : > { %1771 = shalt.err (!%p1768_p11)
}
 0x4b3   : > { %1528 = dma.vmem_to_hbm [thread:$0]  (%p1971_p12), %s2181_s14, 128, %s2186_s24, %s1239_s22  }
 0x4b4 PF: > { %s1265_s23 = sand.u32 1, %s1814_s15   ;;  %p2262_p10 = scmp.ne.s32.totalorder %s2253_s6, 0 }
 0x4b5   : > { %p2263_p0 = scmp.ge.s32.totalorder %s1834_s20, 2  ;;  %s1266_s30 = scalar_lea.sflag [#allocation7], %s1265_s23 }
 0x4b7   : > { %p1545_p8 = pnand %p2263_p0, %p2262_p10 }
 0x4b9   : > { %p1546_p5 = pneg %p1545_p8 }
 0x4bb   : > { %1809 = dma.done.wait (%p1546_p5), %s1266_s30, 128  }
 0x4bc   : > { %1811 = vsyncadd (%p1546_p5), %s1266_s30, 4294967168  ;;  %s24_s20 = sadd.s32 1, %s1834_s20   ;;  %s2264_s18 = sld [smem:[#allocation18_spill]] }
 0x4bd   : > { %p21_p1 = scmp.ge.s32.totalorder %s24_s20, 4   ;;  %s2265_s19 = sld [smem:[#allocation19_spill]] }
 0x4be   : > { %s2266_s15 = smov %s1818_s16  ;;  %s2267_s16 = smov %s1822_s17 }
 0x4bf   : > { %s2268_s17 = smov %s1924_s26  ;;  %23 = sbr.rel (!%p21_p1) target bundleno = 12 (0xc), region = 117 }
 0x4c4   :  { %1271 = vsyncpa [#allocation6], 1 }
 0x4c5   :  { %1273 = vsyncpa [#allocation6 + $0x1], 1 }
 0x4c6   :  { %1274 = vsyncpa [#allocation9], 1 }
 0x4c7   :  { %1276 = vsyncpa [#allocation9 + $0x1], 1 }
 0x4c8   :  { %1277 = vsyncpa [#allocation12], 1 }
 0x4c9   :  { %1278 = vsyncpa [#allocation7], 1 }
 0x4ca   :  { %1280 = vsyncpa [#allocation7 + $0x1], 1 }

</bundles_post_ra>
